<compile_context>
chip_gen: v6e
topology: v6e:2x2x1
jax: 0.10.0
libtpu: 0.0.40
codegen_flags: <defaults>
</compile_context>

<pallas_src>
import functools

import jax
import jax.numpy as jnp
from jax.experimental import pallas as pl
from jax.experimental.pallas import tpu as pltpu

IN_CHANNELS = 3
OUT_CHANNELS = 16
KERNEL_SIZE = 3
KERNEL_SIZE_POOL = 2
SUBTRACT1_VALUE = 0.5
SUBTRACT2_VALUE = 0.2


def _fused_kernel(p_ref, w_ref, o_ref, *, n_off, inv_pool_area, sub2):
    # p_ref: (PP, K_pad, L)  pool-offset-grouped im2col patches; batch folded
    #                        into the lane axis L = pad(N*Hp*Wp, 128); last
    #                        valid K row is all-ones (bias row), rest zero-pad.
    # w_ref: (Cout, K_pad)   conv weight flattened over (Cin,KH,KW) with the
    #                        folded bias (bias - subtract1) as an extra column.
    # o_ref: (Cout, L)       pooled output slab, lane-dense.
    w = w_ref[...]
    acc = jnp.tanh(jnp.dot(w, p_ref[0], preferred_element_type=jnp.float32))
    for j in range(1, n_off):                     # 4 pooling offsets, unrolled
        acc = acc + jnp.tanh(
            jnp.dot(w, p_ref[j], preferred_element_type=jnp.float32))
    o_ref[...] = (acc * inv_pool_area - sub2).astype(o_ref.dtype)


@jax.jit
def conv_sub_tanh_sub_avgpool(x_nchw, weight_oihw, bias):
    """x_nchw: (N, Cin, H, W); weight_oihw: (Cout, Cin, KH, KW); bias: (Cout,)."""
    N, Cin, H, W = x_nchw.shape
    Cout, _, KH, KW = weight_oihw.shape
    pool = KERNEL_SIZE_POOL
    Ho, Wo = H - KH + 1, W - KW + 1
    Hp, Wp = Ho // pool, Wo // pool                 # AvgPool2d floor-truncates
    K = Cin * KH * KW
    M = Hp * Wp
    PP = pool * pool
    NM = N * M
    L = pl.cdiv(NM, 128) * 128                      # lane-dense padded width
    K_AUG = K + 1                                   # +1 "ones" row for the bias
    K_PAD = pl.cdiv(K_AUG, 8) * 8                   # clean sublane tiling (32)

    x = x_nchw.astype(jnp.float32)

    # Pool-offset-grouped im2col (wrapper-side layout plumbing, fused by XLA):
    # patches[dh*pool+dw, ci*KH*KW+kh*KW+kw, n*M + ph*Wp + pw]
    #   = x[n, ci, pool*ph + dh + kh, pool*pw + dw + kw]
    groups = []
    for dh in range(pool):
        for dw in range(pool):
            taps = []
            for ci in range(Cin):
                for kh in range(KH):
                    for kw in range(KW):
                        r0, c0 = dh + kh, dw + kw
                        taps.append(x[:, ci,
                                      r0:r0 + pool * Hp:pool,
                                      c0:c0 + pool * Wp:pool])       # (N,Hp,Wp)
            groups.append(jnp.stack(taps, axis=0).reshape(K, NM))    # (K, N*M)
    patches = jnp.stack(groups, axis=0)                              # (PP,K,NM)
    ones_row = jnp.ones((PP, 1, NM), jnp.float32)                    # bias row
    patches = jnp.concatenate([patches, ones_row], axis=1)           # (PP,K+1,NM)
    patches = jnp.pad(patches,
                      ((0, 0), (0, K_PAD - K_AUG), (0, L - NM)))     # (PP,K_PAD,L)

    w_flat = weight_oihw.reshape(Cout, K).astype(jnp.float32)
    b_fold = (bias.astype(jnp.float32) - SUBTRACT1_VALUE).reshape(Cout, 1)
    w_aug = jnp.concatenate([w_flat, b_fold], axis=1)                # (Cout,K+1)
    w_aug = jnp.pad(w_aug, ((0, 0), (0, K_PAD - K_AUG)))             # (Cout,K_PAD)

    kernel = functools.partial(
        _fused_kernel,
        n_off=PP, inv_pool_area=1.0 / PP, sub2=SUBTRACT2_VALUE)

    out2d = pl.pallas_call(
        kernel,
        out_shape=jax.ShapeDtypeStruct((Cout, L), jnp.float32),
        grid=(1,),                                  # whole (tiny) batch in one step
        in_specs=[
            pl.BlockSpec((PP, K_PAD, L), lambda i: (0, 0, 0)),
            pl.BlockSpec((Cout, K_PAD), lambda i: (0, 0)),
        ],
        out_specs=pl.BlockSpec((Cout, L), lambda i: (0, 0)),
        compiler_params=pltpu.CompilerParams(
            dimension_semantics=("arbitrary",)),
    )(patches, w_aug)

    # Unpack the lane-dense slab back to NCHW (small wrapper-side transpose).
    out = out2d[:, :NM].reshape(Cout, N, M)
    out = jnp.transpose(out, (1, 0, 2)).reshape(N, Cout, Hp, Wp)
    return out


def init_params(key):
    """Deterministic init matching nn.Conv2d shapes (kaiming-uniform-like)."""
    kw, kb = jax.random.split(key)
    fan_in = IN_CHANNELS * KERNEL_SIZE * KERNEL_SIZE
    bound = 1.0 / jnp.sqrt(jnp.float32(fan_in))
    weight = jax.random.uniform(
        kw, (OUT_CHANNELS, IN_CHANNELS, KERNEL_SIZE, KERNEL_SIZE),
        minval=-bound, maxval=bound, dtype=jnp.float32)
    bias = jax.random.uniform(
        kb, (OUT_CHANNELS,), minval=-bound, maxval=bound, dtype=jnp.float32)
    return weight, bias


if __name__ == "__main__":
    key = jax.random.PRNGKey(0)
    k_x, k_p = jax.random.split(key)

    # Small shapes consistent with the module: N=2, Cin=3, H=W=16.
    x = jax.random.normal(k_x, (2, IN_CHANNELS, 16, 16), dtype=jnp.float32)
    weight, bias = init_params(k_p)

    out = conv_sub_tanh_sub_avgpool(x, weight, bias)
    out = jax.block_until_ready(out)

    # Sanity check against a pure-JAX reference of the same forward pass.
    ref_conv = jax.lax.conv_general_dilated(
        x, weight, window_strides=(1, 1), padding="VALID",
        dimension_numbers=("NCHW", "OIHW", "NCHW"))
    ref = jnp.tanh(ref_conv + bias[None, :, None, None] - SUBTRACT1_VALUE) - SUBTRACT2_VALUE
    N, C, Ho, Wo = ref.shape
    Hp, Wp = Ho // KERNEL_SIZE_POOL, Wo // KERNEL_SIZE_POOL
    ref = (ref[:, :, :Hp * KERNEL_SIZE_POOL, :Wp * KERNEL_SIZE_POOL]
           .reshape(N, C, Hp, KERNEL_SIZE_POOL, Wp, KERNEL_SIZE_POOL)
           .mean(axis=(3, 5)))
    assert out.shape == ref.shape == (2, OUT_CHANNELS, 7, 7), (out.shape, ref.shape)
    assert jnp.allclose(out, ref, atol=1e-5, rtol=1e-5)

    print("KERNEL_OK")
</pallas_src>

<mosaic_0001>
module attributes {stable_mosaic.version = 11 : i64} {
  func.func @_fused_kernel(%arg0: i32, %arg1: memref<4x32x128xf32, #tpu.memory_space<vmem>>, %arg2: memref<16x32xf32, #tpu.memory_space<vmem>>, %arg3: memref<16x128xf32, #tpu.memory_space<vmem>>) attributes {dimension_semantics = [#tpu.dimension_semantics<arbitrary>], iteration_bounds = array<i64: 1>, scalar_prefetch = 0 : i64, scratch_operands = 0 : i64, tpu.core_type = #tpu.core_type<tc>, window_params = [{pipeline_mode = #tpu.pipeline_mode<synchronous>, transform_indices = @transform_0, window_bounds = array<i64: 4, 32, 128>}, {pipeline_mode = #tpu.pipeline_mode<synchronous>, transform_indices = @transform_1, window_bounds = array<i64: 16, 32>}, {pipeline_mode = #tpu.pipeline_mode<synchronous>, transform_indices = @transform_2, window_bounds = array<i64: 16, 128>}]} {
    %c0 = arith.constant 0 : index
    %c0_0 = arith.constant 0 : index
    %0 = vector.load %arg2[%c0, %c0_0] : memref<16x32xf32, #tpu.memory_space<vmem>>, vector<16x32xf32>
    %c0_1 = arith.constant 0 : index
    %c0_2 = arith.constant 0 : index
    %c0_3 = arith.constant 0 : index
    %1 = vector.load %arg1[%c0_1, %c0_2, %c0_3] : memref<4x32x128xf32, #tpu.memory_space<vmem>>, vector<1x32x128xf32>
    %2 = vector.shape_cast %1 : vector<1x32x128xf32> to vector<32x128xf32>
    %cst = arith.constant dense<0.000000e+00> : vector<16x128xf32>
    %3 = tpu.matmul %0, %2, %cst {dimension_numbers = #tpu.dot_dimension_numbers<[1], [0], [0], [1], [0, 0, 1, 1], [], []>} : vector<16x32xf32>, vector<32x128xf32>, vector<16x128xf32> -> vector<16x128xf32>
    %4 = math.tanh %3 : vector<16x128xf32>
    %c1 = arith.constant 1 : index
    %c0_4 = arith.constant 0 : index
    %c0_5 = arith.constant 0 : index
    %5 = vector.load %arg1[%c1, %c0_4, %c0_5] : memref<4x32x128xf32, #tpu.memory_space<vmem>>, vector<1x32x128xf32>
    %6 = vector.shape_cast %5 : vector<1x32x128xf32> to vector<32x128xf32>
    %cst_6 = arith.constant dense<0.000000e+00> : vector<16x128xf32>
    %7 = tpu.matmul %0, %6, %cst_6 {dimension_numbers = #tpu.dot_dimension_numbers<[1], [0], [0], [1], [0, 0, 1, 1], [], []>} : vector<16x32xf32>, vector<32x128xf32>, vector<16x128xf32> -> vector<16x128xf32>
    %8 = math.tanh %7 : vector<16x128xf32>
    %9 = arith.addf %4, %8 : vector<16x128xf32>
    %c2 = arith.constant 2 : index
    %c0_7 = arith.constant 0 : index
    %c0_8 = arith.constant 0 : index
    %10 = vector.load %arg1[%c2, %c0_7, %c0_8] : memref<4x32x128xf32, #tpu.memory_space<vmem>>, vector<1x32x128xf32>
    %11 = vector.shape_cast %10 : vector<1x32x128xf32> to vector<32x128xf32>
    %cst_9 = arith.constant dense<0.000000e+00> : vector<16x128xf32>
    %12 = tpu.matmul %0, %11, %cst_9 {dimension_numbers = #tpu.dot_dimension_numbers<[1], [0], [0], [1], [0, 0, 1, 1], [], []>} : vector<16x32xf32>, vector<32x128xf32>, vector<16x128xf32> -> vector<16x128xf32>
    %13 = math.tanh %12 : vector<16x128xf32>
    %14 = arith.addf %9, %13 : vector<16x128xf32>
    %c3 = arith.constant 3 : index
    %c0_10 = arith.constant 0 : index
    %c0_11 = arith.constant 0 : index
    %15 = vector.load %arg1[%c3, %c0_10, %c0_11] : memref<4x32x128xf32, #tpu.memory_space<vmem>>, vector<1x32x128xf32>
    %16 = vector.shape_cast %15 : vector<1x32x128xf32> to vector<32x128xf32>
    %cst_12 = arith.constant dense<0.000000e+00> : vector<16x128xf32>
    %17 = tpu.matmul %0, %16, %cst_12 {dimension_numbers = #tpu.dot_dimension_numbers<[1], [0], [0], [1], [0, 0, 1, 1], [], []>} : vector<16x32xf32>, vector<32x128xf32>, vector<16x128xf32> -> vector<16x128xf32>
    %18 = math.tanh %17 : vector<16x128xf32>
    %19 = arith.addf %14, %18 : vector<16x128xf32>
    %cst_13 = arith.constant 2.500000e-01 : f32
    %20 = vector.broadcast %cst_13 : f32 to vector<16x128xf32>
    %21 = arith.mulf %19, %20 : vector<16x128xf32>
    %cst_14 = arith.constant 2.000000e-01 : f32
    %22 = vector.broadcast %cst_14 : f32 to vector<16x128xf32>
    %23 = arith.subf %21, %22 : vector<16x128xf32>
    %c0_15 = arith.constant 0 : index
    %c0_16 = arith.constant 0 : index
    %24 = vector.load %arg3[%c0_15, %c0_16] : memref<16x128xf32, #tpu.memory_space<vmem>>, vector<16x128xf32>
    tpu.vector_store %arg3[%c0_15, %c0_16], %23 {strides = array<i32>} : memref<16x128xf32, #tpu.memory_space<vmem>>, vector<16x128xf32>,
    return
  }
  func.func @transform_0(%arg0: i32) -> (i32, i32, i32) {
    %c0_i32 = arith.constant 0 : i32
    %c0_i32_0 = arith.constant 0 : i32
    %c0_i32_1 = arith.constant 0 : i32
    %c0_i32_2 = arith.constant 0 : i32
    return %c0_i32, %c0_i32_0, %c0_i32_1 : i32, i32, i32
  }
  func.func @transform_1(%arg0: i32) -> (i32, i32) {
    %c0_i32 = arith.constant 0 : i32
    %c0_i32_0 = arith.constant 0 : i32
    %c0_i32_1 = arith.constant 0 : i32
    return %c0_i32, %c0_i32_0 : i32, i32
  }
  func.func @transform_2(%arg0: i32) -> (i32, i32) {
    %c0_i32 = arith.constant 0 : i32
    %c0_i32_0 = arith.constant 0 : i32
    %c0_i32_1 = arith.constant 0 : i32
    return %c0_i32, %c0_i32_0 : i32, i32
  }
}

</mosaic_0001>

<bundles_post_ra>
// kernel: conv_sub_tanh_sub_avgpool.1
= control target key start
LH: loop header
LB: loop body
LE: loop exit
PB: predicated region body
PF: predicated region fallthrough
CT: control target
= control target key end

     0   :  { %vm17_vm0 = vcmask 261120   ;;  %s552_s0 = inlined_call_operand.vmem [shape: f32[4,32,128], index: 0, kind: input, shape index: {}]   ;;  %s553_s1 = inlined_call_operand.vmem [shape: f32[16,32], index: 1, kind: input, shape index: {}]   ;;  %s554_s2 = inlined_call_operand.vmem [shape: f32[16,128], index: 2, kind: output, shape index: {}]  }
   0x1   :  { %v16_v0 = vld [vmem:[%s552_s0 + $0x18] sm:$0xff]  ;;  %v15_v2 = vld [vmem:[%s552_s0 + $0x10] sm:$0xff]  ;;  %v14_v4 = vld [vmem:[%s552_s0 + $0x8] sm:$0xff] }
   0x2   :  { %v368_v1 = vld [vmem:[%s552_s0 + $0x38] sm:$0xff]  ;;  %409 = vmatprep.subr.mxu0 %v16_v0  ;;  %v367_v3 = vld [vmem:[%s552_s0 + $0x30] sm:$0xff]  ;;  %v366_v5 = vld [vmem:[%s552_s0 + $0x28] sm:$0xff] }
   0x3   :  { %420 = vmatprep.subr.mxu1 %v368_v1  ;;  %410 = vmatpush3.msra.mxu0 %v16_v0  ;;  %v13_v6 = vld [vmem:[%s552_s0] sm:$0xff]  ;;  %v12_v9 = vld [vmem:[%s553_s1 + $0x8] sm:$0xff]  ;;  %v374_v10 = vld [vmem:[%s552_s0 + $0x58] sm:$0xff] }
   0x4   :  { %421 = vmatpush3.msra.mxu1 %v368_v1  ;;  %411 = vmatprep.subr.mxu0 %v15_v2  ;;  %v365_v7 = vld [vmem:[%s552_s0 + $0x20] sm:$0xff]  ;;  %v380_v11 = vld [vmem:[%s552_s0 + $0x78] sm:$0xff]  ;;  %v373_v12 = vld [vmem:[%s552_s0 + $0x50] sm:$0xff] }
   0x5   :  { %422 = vmatprep.subr.mxu1 %v367_v3  ;;  %412 = vmatpush3.msra.mxu0 %v15_v2  ;;  %v11_v8 = vld [vmem:[%s553_s1] sm:$0xff]  ;;  %v379_v13 = vld [vmem:[%s552_s0 + $0x70] sm:$0xff]  ;;  %v372_v14 = vld [vmem:[%s552_s0 + $0x48] sm:$0xff] }
   0x6   :  { %423 = vmatpush3.msra.mxu1 %v367_v3  ;;  %413 = vmatprep.subr.mxu0 %v14_v4  ;;  %v378_v15 = vld [vmem:[%s552_s0 + $0x68] sm:$0xff]  ;;  %v371_v16 = vld [vmem:[%s552_s0 + $0x40] sm:$0xff] }
   0x7   :  { %424 = vmatprep.subr.mxu1 %v366_v5  ;;  %414 = vmatpush3.msra.mxu0 %v14_v4  ;;  %v377_v17 = vld [vmem:[%s552_s0 + $0x60] sm:$0xff] }
   0x8   :  { %425 = vmatpush3.msra.mxu1 %v366_v5  ;;  %415 = vmatprep.subr.mxu0 %v13_v6 }
   0x9   :  { %426 = vmatprep.subr.mxu1 %v365_v7  ;;  %416 = vmatpush3.msra.mxu0 %v13_v6 }
   0xa   :  { %417 = vmatprep.mubr.msk.f32.mxu0 %vm17_vm0, %v11_v8  ;;  %427 = vmatpush3.msra.mxu1 %v365_v7 }
   0xb   :  { %428 = vmatprep.mubr.msk.f32.mxu1 %vm17_vm0, %v11_v8  ;;  %418 = vmatmul.mubr.msk.f32.vlgmr.msra.gmra.mxu0 %vm17_vm0, %v12_v9 }
   0xc   :  { %429 = vmatmul.mubr.msk.f32.vlgmr.msra.gmra.mxu1 %vm17_vm0, %v12_v9  ;;  %431 = vmatprep.subr.mxu0 %v374_v10 }
   0xd   :  { %442 = vmatprep.subr.mxu1 %v380_v11  ;;  %432 = vmatpush3.msra.mxu0 %v374_v10 }
   0xe   :  { %443 = vmatpush3.msra.mxu1 %v380_v11  ;;  %433 = vmatprep.subr.mxu0 %v373_v12 }
   0xf   :  { %444 = vmatprep.subr.mxu1 %v379_v13  ;;  %434 = vmatpush3.msra.mxu0 %v373_v12 }
  0x10   :  { %445 = vmatpush3.msra.mxu1 %v379_v13  ;;  %435 = vmatprep.subr.mxu0 %v372_v14 }
  0x11   :  { %446 = vmatprep.subr.mxu1 %v378_v15  ;;  %436 = vmatpush3.msra.mxu0 %v372_v14 }
  0x12   :  { %447 = vmatpush3.msra.mxu1 %v378_v15  ;;  %437 = vmatprep.subr.mxu0 %v371_v16 }
  0x13   :  { %448 = vmatprep.subr.mxu1 %v377_v17  ;;  %438 = vmatpush3.msra.mxu0 %v371_v16 }
  0x14   :  { %439 = vmatprep.mubr.msk.f32.mxu0 %vm17_vm0, %v11_v8  ;;  %449 = vmatpush3.msra.mxu1 %v377_v17 }
  0x15   :  { %450 = vmatprep.mubr.msk.f32.mxu1 %vm17_vm0, %v11_v8  ;;  %440 = vmatmul.mubr.msk.f32.vlgmr.msra.gmra.mxu0 %vm17_vm0, %v12_v9 }
  0x16   :  { %451 = vmatmul.mubr.msk.f32.vlgmr.msra.gmra.mxu1 %vm17_vm0, %v12_v9 }
  0xcb   :  { %v419_v18 = vpop.f32.mrf.mxu0 }
  0xcc   :  { %v430_v19 = vpop.f32.mrf.mxu1  ;;  %453 = vtanh.f32 %v419_v18 }
  0xcd   :  { %v90_v20 = vpop.f32.mrf.mxu0  ;;  %455 = vtanh.f32 %v430_v19 }
  0xce   :  { %v172_v21 = vpop.f32.mrf.mxu1  ;;  %457 = vtanh.f32 %v90_v20 }
  0xcf   :  { %459 = vtanh.f32 %v172_v21 }
  0xd5   :  { %v441_v22 = vpop.f32.mrf.mxu0 }
  0xd6   :  { %v452_v23 = vpop.f32.mrf.mxu1  ;;  %461 = vtanh.f32 %v441_v22 }
  0xd7   :  { %463 = vtanh.f32 %v452_v23  ;;  %v256_v24 = vpop.f32.mrf.mxu0 }
  0xd8   :  { %v340_v25 = vpop.f32.mrf.mxu1  ;;  %465 = vtanh.f32 %v256_v24 }
  0xd9   :  { %467 = vtanh.f32 %v340_v25  ;;  %v454_v26 = vpop.eup %453 }
  0xda   :  { %v456_v27 = vpop.eup %455 }
  0xdb   :  { %v458_v28 = vpop.eup %457  ;;  %v184_v30 = vadd.f32 %v456_v27, %v454_v26 }
  0xdc   :  { %v460_v29 = vpop.eup %459 }
  0xdd   :  { %v183_v33 = vadd.f32 %v460_v29, %v458_v28 }
  0xe3   :  { %v462_v31 = vpop.eup %461 }
  0xe4   :  { %v464_v32 = vpop.eup %463  ;;  %v268_v34 = vadd.f32 %v462_v31, %v184_v30 }
  0xe5   :  { %v466_v35 = vpop.eup %465 }
  0xe6   :  { %v352_v36 = vadd.f32 %v464_v32, %v268_v34  ;;  %v267_v37 = vadd.f32 %v466_v35, %v183_v33  ;;  %v468_v38 = vpop.eup %467 }
  0xe8   :  { %v354_v39 = vmul.f32 0.25, %v352_v36  ;;  %v351_v40 = vadd.f32 %v468_v38, %v267_v37 }
  0xea   :  { %v384_v41 = vadd.f32 -0.2, %v354_v39  ;;  %v353_v42 = vmul.f32 0.25, %v351_v40 }
  0xec   :  { %358 = vst [vmem:[%s554_s2 + $0x8] sm:$0xff] %v384_v41  ;;  %v383_v43 = vadd.f32 -0.2, %v353_v42 }
  0xee   :  { %357 = vst [vmem:[%s554_s2] sm:$0xff] %v383_v43 }

</bundles_post_ra>
